<compile_context>
chip_gen: v7x
topology: tpu7x:2x2x1
jax: 0.10.0
libtpu: 0.0.40
codegen_flags: <defaults>
</compile_context>

<pallas_src>
import math

import jax
import jax.numpy as jnp
from jax.experimental import pallas as pl
from jax.experimental.pallas import tpu as pltpu


LANE = 128


def _round_up(x, m):
    return ((x + m - 1) // m) * m


# ----------------------------- Pallas kernel ---------------------------------
def dnncat2_kernel(x_ref, xu_ref, temb_ref,
                   wx_ref, wu_ref, we_ref, bcat_ref, bemb_ref,
                   w2_ref, b2_ref, w3_ref, b3_ref,
                   o_ref):
    # Cast activations to bf16 in-kernel (VPU) so all dots take the native bf16 MXU
    # path; accumulation and biases stay f32.
    x = x_ref[...].astype(jnp.bfloat16)
    xu = xu_ref[...].astype(jnp.bfloat16)
    temb = temb_ref[...].astype(jnp.bfloat16)

    # Layer 1: cat_layer(x, x_U) and emb_layer(temb) land on disjoint padded lanes.
    z_cat = (jnp.dot(x, wx_ref[...], preferred_element_type=jnp.float32)
             + jnp.dot(xu, wu_ref[...], preferred_element_type=jnp.float32)
             + bcat_ref[...])
    z_emb = (jnp.dot(temb, we_ref[...], preferred_element_type=jnp.float32)
             + bemb_ref[...])
    # tanh only affects the cat lanes; on emb / padding lanes z_cat == 0 and
    # tanh(0) == 0, so a plain add reproduces concat([tanh(cat), emb]) with no mask.
    z = jnp.tanh(z_cat) + z_emb

    # TODO(synk): nn.Dropout(p=0.5) treated as identity (inference semantics);
    # norm=False in the reference config so F.normalize is skipped.
    # TODO(synk): torch's x.squeeze() changes rank when B==1; kernel keeps 2-D (B>=2).

    # in_layers[0] + relu  (padded rows/cols of w2 are zero, so padding stays zero).
    h = jnp.dot(z.astype(jnp.bfloat16), w2_ref[...],
                preferred_element_type=jnp.float32) + b2_ref[...]
    h = jnp.maximum(h, 0.0)

    # out_layers[0] (last layer -> no relu).  Lane-dense padded store (128 cols).
    o_ref[...] = (jnp.dot(h.astype(jnp.bfloat16), w3_ref[...],
                          preferred_element_type=jnp.float32)
                  + b3_ref[...]).astype(o_ref.dtype)


# ------------------------------ glue (plain JAX) ------------------------------
def timestep_embedding(timesteps, dim, max_period=10000):
    half = dim // 2
    freqs = jnp.exp(
        -math.log(max_period) * jnp.arange(half, dtype=jnp.float32) / half)
    args = timesteps[:, None].astype(jnp.float32) * freqs[None]
    emb = jnp.concatenate([jnp.cos(args), jnp.sin(args)], axis=-1)
    if dim % 2:
        emb = jnp.concatenate([emb, jnp.zeros_like(emb[:, :1])], axis=-1)
    return emb


def init_params(key, in_dims, out_dims, emb_size, cat_dim):
    """Xavier-ish normal init matching DNNCat2.init_weights (raw, interleaved layout).

    Weights are [in_features, out_features] (already transposed vs. nn.Linear).
    """
    in0 = in_dims[0]
    in_dims_temp = [in0 + emb_size] + list(in_dims[1:])
    out_dims_temp = list(out_dims)

    keys = iter(jax.random.split(key, 32))

    def linear(fan_in, fan_out):
        std = math.sqrt(2.0 / (fan_in + fan_out))
        w = std * jax.random.normal(next(keys), (fan_in, fan_out), jnp.float32)
        b = 0.001 * jax.random.normal(next(keys), (1, fan_out), jnp.float32)
        return w, b

    p = {}
    p['emb_w'], p['emb_b'] = linear(emb_size, emb_size)
    p['cat_w'], p['cat_b'] = linear((cat_dim + 1) * in0, in0)   # interleaved rows
    p['in_w0'], p['in_b0'] = linear(in_dims_temp[0], in_dims_temp[1])
    p['out_w0'], p['out_b0'] = linear(out_dims_temp[0], out_dims_temp[1])
    return p


def pack_params(raw, in0, emb_size, cat_dim, hidden, out_dim):
    """One-time: de-interleave cat_w, split layer-1 into per-input segments, pad every
    feature dim to 128 lanes, and cast weights to bf16 (biases stay f32)."""
    z_dim = in0 + emb_size
    Z = _round_up(z_dim, LANE)
    H = _round_up(hidden, LANE)
    O = _round_up(out_dim, LANE)

    # cat_w rows are ordered (r, c): c=0 -> x[:, r], c=1..cat_dim -> x_U[:, r, c-1].
    cat_w_3d = raw['cat_w'].reshape(in0, cat_dim + 1, in0)
    cat_w_x = cat_w_3d[:, 0, :]                                   # [in0, in0]
    cat_w_u = cat_w_3d[:, 1:, :].reshape(in0 * cat_dim, in0)      # [in0*cat_dim, in0]

    wx = jnp.zeros((in0, Z), jnp.float32).at[:, :in0].set(cat_w_x)
    wu = jnp.zeros((in0 * cat_dim, Z), jnp.float32).at[:, :in0].set(cat_w_u)
    we = jnp.zeros((emb_size, Z), jnp.float32).at[:, in0:z_dim].set(raw['emb_w'])
    bcat = jnp.zeros((1, Z), jnp.float32).at[:, :in0].set(raw['cat_b'])
    bemb = jnp.zeros((1, Z), jnp.float32).at[:, in0:z_dim].set(raw['emb_b'])

    w2 = jnp.zeros((Z, H), jnp.float32).at[:z_dim, :hidden].set(raw['in_w0'])
    b2 = jnp.zeros((1, H), jnp.float32).at[:, :hidden].set(raw['in_b0'])
    w3 = jnp.zeros((H, O), jnp.float32).at[:hidden, :out_dim].set(raw['out_w0'])
    b3 = jnp.zeros((1, O), jnp.float32).at[:, :out_dim].set(raw['out_b0'])

    bf = lambda a: a.astype(jnp.bfloat16)
    return {'wx': bf(wx), 'wu': bf(wu), 'we': bf(we),
            'bcat': bcat, 'bemb': bemb,
            'w2': bf(w2), 'b2': b2,
            'w3': bf(w3), 'b3': b3}


def _full_spec(a):
    nd = a.ndim
    return pl.BlockSpec(a.shape, lambda i, _nd=nd: (0,) * _nd)


def dnncat2_forward(params, x, timesteps, x_U, *, out_dim):
    B, in0 = x.shape
    cat_dim = x_U.shape[2]
    emb_size = params['we'].shape[0]
    Z = params['wx'].shape[1]
    H = params['w2'].shape[1]
    O = params['w3'].shape[1]

    # Cheap (copy-free) operand prep: no packed concat is materialized in HBM.
    temb = timestep_embedding(timesteps, emb_size)        # [B, emb_size]
    xu = x_U.reshape(B, in0 * cat_dim)                    # contiguous view

    # Batch tiling: full-extent block for small B; otherwise large tiles with at
    # least 2 grid steps so the "parallel" axis can shard across TensorCores (v7x).
    if B < 512:
        block_b = B
    else:
        block_b = min(4096, _round_up(pl.cdiv(B, 2), 8))
    grid = (pl.cdiv(B, block_b),)

    k_in = in0 * (cat_dim + 1) + emb_size
    cost = pl.CostEstimate(
        flops=2 * B * (in0 * Z + in0 * cat_dim * Z + emb_size * Z + Z * H + H * O),
        transcendentals=B * Z,
        bytes_accessed=(4 * B * (k_in + O)
                        + 2 * (in0 * (cat_dim + 1) * Z + emb_size * Z + Z * H + H * O)
                        + 4 * (2 * Z + H + O)))

    out_padded = pl.pallas_call(
        dnncat2_kernel,
        out_shape=jax.ShapeDtypeStruct((B, O), jnp.float32),
        grid=grid,
        in_specs=[pl.BlockSpec((block_b, in0), lambda i: (i, 0)),
                  pl.BlockSpec((block_b, in0 * cat_dim), lambda i: (i, 0)),
                  pl.BlockSpec((block_b, emb_size), lambda i: (i, 0)),
                  _full_spec(params['wx']), _full_spec(params['wu']),
                  _full_spec(params['we']),
                  _full_spec(params['bcat']), _full_spec(params['bemb']),
                  _full_spec(params['w2']), _full_spec(params['b2']),
                  _full_spec(params['w3']), _full_spec(params['b3'])],
        out_specs=pl.BlockSpec((block_b, O), lambda i: (i, 0)),
        compiler_params=pltpu.CompilerParams(
            dimension_semantics=("parallel",)),
        cost_estimate=cost,
    )(x, xu, temb,
      params['wx'], params['wu'], params['we'],
      params['bcat'], params['bemb'],
      params['w2'], params['b2'], params['w3'], params['b3'])

    return out_padded[:, :out_dim]


# Entire forward (glue + kernel + slice) under a single jit -> one dispatch.
dnncat2_forward_jit = jax.jit(dnncat2_forward, static_argnames=('out_dim',))


# Pure-JAX reference (f32) mirroring the torch module, for validation.
def reference_forward(raw, x, timesteps, x_U, emb_size):
    B, in0 = x.shape
    xcat = jnp.concatenate([x[:, :, None], x_U], axis=2).reshape(B, -1)
    temb = timestep_embedding(timesteps, emb_size)
    emb = temb @ raw['emb_w'] + raw['emb_b']
    xc = jnp.tanh(xcat @ raw['cat_w'] + raw['cat_b'])
    h = jnp.concatenate([xc, emb], axis=-1)
    h = jnp.maximum(h @ raw['in_w0'] + raw['in_b0'], 0.0)
    return h @ raw['out_w0'] + raw['out_b0']


# ---------------------------------- main --------------------------------------
if __name__ == "__main__":
    # Small config consistent with the module:
    #   in_dims = [32, 16], out_dims = [16, 32]  (out_dims[0] == in_dims[-1])
    #   emb_size = 8, cat_dim = 2, batch = 2
    B, in0, hidden, emb_size, cat_dim = 2, 32, 16, 8, 2
    in_dims = [in0, hidden]
    out_dims = [hidden, in0]
    out_dim = out_dims[-1]

    root = jax.random.PRNGKey(0)
    k_params, k_x, k_xu = jax.random.split(root, 3)

    raw = init_params(k_params, in_dims, out_dims, emb_size, cat_dim)
    params = pack_params(raw, in0, emb_size, cat_dim, hidden, out_dim)

    x = jax.random.normal(k_x, (B, in0), jnp.float32)
    x_U = jax.random.normal(k_xu, (B, in0, cat_dim), jnp.float32)
    timesteps = jnp.array([3.0, 7.0], dtype=jnp.float32)

    out = dnncat2_forward_jit(params, x, timesteps, x_U, out_dim=out_dim)
    out = jax.block_until_ready(out)

    ref = reference_forward(raw, x, timesteps, x_U, emb_size)

    assert out.shape == (B, out_dim), out.shape
    assert bool(jnp.all(jnp.isfinite(out)))
    # bf16 weights / in-kernel bf16 activations -> loose-but-meaningful tolerance.
    assert bool(jnp.allclose(out, ref, atol=5e-2, rtol=5e-2)), (
        float(jnp.max(jnp.abs(out - ref))))
    print("KERNEL_OK")
</pallas_src>

<mosaic_0001>
module attributes {stable_mosaic.version = 11 : i64} {
  func.func @dnncat2_kernel(%arg0: i32, %arg1: memref<2x32xf32, #tpu.memory_space<vmem>>, %arg2: memref<2x64xf32, #tpu.memory_space<vmem>>, %arg3: memref<2x8xf32, #tpu.memory_space<vmem>>, %arg4: memref<32x128xbf16, #tpu.memory_space<vmem>>, %arg5: memref<64x128xbf16, #tpu.memory_space<vmem>>, %arg6: memref<8x128xbf16, #tpu.memory_space<vmem>>, %arg7: memref<1x128xf32, #tpu.memory_space<vmem>>, %arg8: memref<1x128xf32, #tpu.memory_space<vmem>>, %arg9: memref<128x128xbf16, #tpu.memory_space<vmem>>, %arg10: memref<1x128xf32, #tpu.memory_space<vmem>>, %arg11: memref<128x128xbf16, #tpu.memory_space<vmem>>, %arg12: memref<1x128xf32, #tpu.memory_space<vmem>>, %arg13: memref<2x128xf32, #tpu.memory_space<vmem>>) attributes {dimension_semantics = [#tpu.dimension_semantics<parallel>], iteration_bounds = array<i64: 1>, scalar_prefetch = 0 : i64, scratch_operands = 0 : i64, tpu.core_type = #tpu.core_type<tc>, window_params = [{transform_indices = @transform_0, window_bounds = array<i64: 2, 32>}, {transform_indices = @transform_1, window_bounds = array<i64: 2, 64>}, {transform_indices = @transform_2, window_bounds = array<i64: 2, 8>}, {pipeline_mode = #tpu.pipeline_mode<synchronous>, transform_indices = @transform_3, window_bounds = array<i64: 32, 128>}, {pipeline_mode = #tpu.pipeline_mode<synchronous>, transform_indices = @transform_4, window_bounds = array<i64: 64, 128>}, {pipeline_mode = #tpu.pipeline_mode<synchronous>, transform_indices = @transform_5, window_bounds = array<i64: 8, 128>}, {pipeline_mode = #tpu.pipeline_mode<synchronous>, transform_indices = @transform_6, window_bounds = array<i64: 1, 128>}, {pipeline_mode = #tpu.pipeline_mode<synchronous>, transform_indices = @transform_7, window_bounds = array<i64: 1, 128>}, {pipeline_mode = #tpu.pipeline_mode<synchronous>, transform_indices = @transform_8, window_bounds = array<i64: 128, 128>}, {pipeline_mode = #tpu.pipeline_mode<synchronous>, transform_indices = @transform_9, window_bounds = array<i64: 1, 128>}, {pipeline_mode = #tpu.pipeline_mode<synchronous>, transform_indices = @transform_10, window_bounds = array<i64: 128, 128>}, {pipeline_mode = #tpu.pipeline_mode<synchronous>, transform_indices = @transform_11, window_bounds = array<i64: 1, 128>}, {transform_indices = @transform_12, window_bounds = array<i64: 2, 128>}]} {
    %c0 = arith.constant 0 : index
    %c0_0 = arith.constant 0 : index
    %0 = vector.load %arg1[%c0, %c0_0] : memref<2x32xf32, #tpu.memory_space<vmem>>, vector<2x32xf32>
    %1 = arith.truncf %0 : vector<2x32xf32> to vector<2x32xbf16>
    %c0_1 = arith.constant 0 : index
    %c0_2 = arith.constant 0 : index
    %2 = vector.load %arg2[%c0_1, %c0_2] : memref<2x64xf32, #tpu.memory_space<vmem>>, vector<2x64xf32>
    %3 = arith.truncf %2 : vector<2x64xf32> to vector<2x64xbf16>
    %c0_3 = arith.constant 0 : index
    %c0_4 = arith.constant 0 : index
    %4 = vector.load %arg3[%c0_3, %c0_4] : memref<2x8xf32, #tpu.memory_space<vmem>>, vector<2x8xf32>
    %5 = arith.truncf %4 : vector<2x8xf32> to vector<2x8xbf16>
    %c0_5 = arith.constant 0 : index
    %c0_6 = arith.constant 0 : index
    %6 = vector.load %arg4[%c0_5, %c0_6] : memref<32x128xbf16, #tpu.memory_space<vmem>>, vector<32x128xbf16>
    %cst = arith.constant dense<0.000000e+00> : vector<2x128xf32>
    %7 = tpu.matmul %1, %6, %cst {dimension_numbers = #tpu.dot_dimension_numbers<[1], [0], [0], [1], [0, 0, 1, 1], [], []>} : vector<2x32xbf16>, vector<32x128xbf16>, vector<2x128xf32> -> vector<2x128xf32>
    %c0_7 = arith.constant 0 : index
    %c0_8 = arith.constant 0 : index
    %8 = vector.load %arg5[%c0_7, %c0_8] : memref<64x128xbf16, #tpu.memory_space<vmem>>, vector<64x128xbf16>
    %cst_9 = arith.constant dense<0.000000e+00> : vector<2x128xf32>
    %9 = tpu.matmul %3, %8, %cst_9 {dimension_numbers = #tpu.dot_dimension_numbers<[1], [0], [0], [1], [0, 0, 1, 1], [], []>} : vector<2x64xbf16>, vector<64x128xbf16>, vector<2x128xf32> -> vector<2x128xf32>
    %10 = arith.addf %7, %9 : vector<2x128xf32>
    %c0_10 = arith.constant 0 : index
    %c0_11 = arith.constant 0 : index
    %11 = vector.load %arg7[%c0_10, %c0_11] : memref<1x128xf32, #tpu.memory_space<vmem>>, vector<1x128xf32>
    %12 = vector.broadcast %11 : vector<1x128xf32> to vector<2x128xf32>
    %13 = arith.addf %10, %12 : vector<2x128xf32>
    %c0_12 = arith.constant 0 : index
    %c0_13 = arith.constant 0 : index
    %14 = vector.load %arg6[%c0_12, %c0_13] : memref<8x128xbf16, #tpu.memory_space<vmem>>, vector<8x128xbf16>
    %cst_14 = arith.constant dense<0.000000e+00> : vector<2x128xf32>
    %15 = tpu.matmul %5, %14, %cst_14 {dimension_numbers = #tpu.dot_dimension_numbers<[1], [0], [0], [1], [0, 0, 1, 1], [], []>} : vector<2x8xbf16>, vector<8x128xbf16>, vector<2x128xf32> -> vector<2x128xf32>
    %c0_15 = arith.constant 0 : index
    %c0_16 = arith.constant 0 : index
    %16 = vector.load %arg8[%c0_15, %c0_16] : memref<1x128xf32, #tpu.memory_space<vmem>>, vector<1x128xf32>
    %17 = vector.broadcast %16 : vector<1x128xf32> to vector<2x128xf32>
    %18 = arith.addf %15, %17 : vector<2x128xf32>
    %19 = math.tanh %13 : vector<2x128xf32>
    %20 = arith.addf %19, %18 : vector<2x128xf32>
    %21 = arith.truncf %20 : vector<2x128xf32> to vector<2x128xbf16>
    %c0_17 = arith.constant 0 : index
    %c0_18 = arith.constant 0 : index
    %22 = vector.load %arg9[%c0_17, %c0_18] : memref<128x128xbf16, #tpu.memory_space<vmem>>, vector<128x128xbf16>
    %cst_19 = arith.constant dense<0.000000e+00> : vector<2x128xf32>
    %23 = tpu.matmul %21, %22, %cst_19 {dimension_numbers = #tpu.dot_dimension_numbers<[1], [0], [0], [1], [0, 0, 1, 1], [], []>} : vector<2x128xbf16>, vector<128x128xbf16>, vector<2x128xf32> -> vector<2x128xf32>
    %c0_20 = arith.constant 0 : index
    %c0_21 = arith.constant 0 : index
    %24 = vector.load %arg10[%c0_20, %c0_21] : memref<1x128xf32, #tpu.memory_space<vmem>>, vector<1x128xf32>
    %25 = vector.broadcast %24 : vector<1x128xf32> to vector<2x128xf32>
    %26 = arith.addf %23, %25 : vector<2x128xf32>
    %cst_22 = arith.constant 0.000000e+00 : f32
    %27 = vector.broadcast %cst_22 : f32 to vector<2x128xf32>
    %28 = arith.maximumf %26, %27 : vector<2x128xf32>
    %29 = arith.truncf %28 : vector<2x128xf32> to vector<2x128xbf16>
    %c0_23 = arith.constant 0 : index
    %c0_24 = arith.constant 0 : index
    %30 = vector.load %arg11[%c0_23, %c0_24] : memref<128x128xbf16, #tpu.memory_space<vmem>>, vector<128x128xbf16>
    %cst_25 = arith.constant dense<0.000000e+00> : vector<2x128xf32>
    %31 = tpu.matmul %29, %30, %cst_25 {dimension_numbers = #tpu.dot_dimension_numbers<[1], [0], [0], [1], [0, 0, 1, 1], [], []>} : vector<2x128xbf16>, vector<128x128xbf16>, vector<2x128xf32> -> vector<2x128xf32>
    %c0_26 = arith.constant 0 : index
    %c0_27 = arith.constant 0 : index
    %32 = vector.load %arg12[%c0_26, %c0_27] : memref<1x128xf32, #tpu.memory_space<vmem>>, vector<1x128xf32>
    %33 = vector.broadcast %32 : vector<1x128xf32> to vector<2x128xf32>
    %34 = arith.addf %31, %33 : vector<2x128xf32>
    %c0_28 = arith.constant 0 : index
    %c0_29 = arith.constant 0 : index
    %35 = vector.load %arg13[%c0_28, %c0_29] : memref<2x128xf32, #tpu.memory_space<vmem>>, vector<2x128xf32>
    tpu.vector_store %arg13[%c0_28, %c0_29], %34 {strides = array<i32>} : memref<2x128xf32, #tpu.memory_space<vmem>>, vector<2x128xf32>,
    return
  }
  func.func @transform_0(%arg0: i32) -> (i32, i32) {
    %c0_i32 = arith.constant 0 : i32
    %c0_i32_0 = arith.constant 0 : i32
    return %arg0, %c0_i32 : i32, i32
  }
  func.func @transform_1(%arg0: i32) -> (i32, i32) {
    %c0_i32 = arith.constant 0 : i32
    %c0_i32_0 = arith.constant 0 : i32
    return %arg0, %c0_i32 : i32, i32
  }
  func.func @transform_2(%arg0: i32) -> (i32, i32) {
    %c0_i32 = arith.constant 0 : i32
    %c0_i32_0 = arith.constant 0 : i32
    return %arg0, %c0_i32 : i32, i32
  }
  func.func @transform_3(%arg0: i32) -> (i32, i32) {
    %c0_i32 = arith.constant 0 : i32
    %c0_i32_0 = arith.constant 0 : i32
    %c0_i32_1 = arith.constant 0 : i32
    return %c0_i32, %c0_i32_0 : i32, i32
  }
  func.func @transform_4(%arg0: i32) -> (i32, i32) {
    %c0_i32 = arith.constant 0 : i32
    %c0_i32_0 = arith.constant 0 : i32
    %c0_i32_1 = arith.constant 0 : i32
    return %c0_i32, %c0_i32_0 : i32, i32
  }
  func.func @transform_5(%arg0: i32) -> (i32, i32) {
    %c0_i32 = arith.constant 0 : i32
    %c0_i32_0 = arith.constant 0 : i32
    %c0_i32_1 = arith.constant 0 : i32
    return %c0_i32, %c0_i32_0 : i32, i32
  }
  func.func @transform_6(%arg0: i32) -> (i32, i32) {
    %c0_i32 = arith.constant 0 : i32
    %c0_i32_0 = arith.constant 0 : i32
    %c0_i32_1 = arith.constant 0 : i32
    return %c0_i32, %c0_i32_0 : i32, i32
  }
  func.func @transform_7(%arg0: i32) -> (i32, i32) {
    %c0_i32 = arith.constant 0 : i32
    %c0_i32_0 = arith.constant 0 : i32
    %c0_i32_1 = arith.constant 0 : i32
    return %c0_i32, %c0_i32_0 : i32, i32
  }
  func.func @transform_8(%arg0: i32) -> (i32, i32) {
    %c0_i32 = arith.constant 0 : i32
    %c0_i32_0 = arith.constant 0 : i32
    %c0_i32_1 = arith.constant 0 : i32
    return %c0_i32, %c0_i32_0 : i32, i32
  }
  func.func @transform_9(%arg0: i32) -> (i32, i32) {
    %c0_i32 = arith.constant 0 : i32
    %c0_i32_0 = arith.constant 0 : i32
    %c0_i32_1 = arith.constant 0 : i32
    return %c0_i32, %c0_i32_0 : i32, i32
  }
  func.func @transform_10(%arg0: i32) -> (i32, i32) {
    %c0_i32 = arith.constant 0 : i32
    %c0_i32_0 = arith.constant 0 : i32
    %c0_i32_1 = arith.constant 0 : i32
    return %c0_i32, %c0_i32_0 : i32, i32
  }
  func.func @transform_11(%arg0: i32) -> (i32, i32) {
    %c0_i32 = arith.constant 0 : i32
    %c0_i32_0 = arith.constant 0 : i32
    %c0_i32_1 = arith.constant 0 : i32
    return %c0_i32, %c0_i32_0 : i32, i32
  }
  func.func @transform_12(%arg0: i32) -> (i32, i32) {
    %c0_i32 = arith.constant 0 : i32
    %c0_i32_0 = arith.constant 0 : i32
    return %arg0, %c0_i32 : i32, i32
  }
}

</mosaic_0001>

<bundles_post_ra>
// kernel: dnncat2_forward.1
= control target key start
LH: loop header
LB: loop body
LE: loop exit
PB: predicated region body
PF: predicated region fallthrough
CT: control target
= control target key end

     0   :  { %17 = vsyncpa [#allocation3], 0  ;;  %s1102_s0 = inlined_call_operand.vmem [shape: f32[2,32], index: 0, kind: input, shape index: {}]   ;;  %s1103_s1 = inlined_call_operand.vmem [shape: f32[2,64], index: 1, kind: input, shape index: {}]   ;;  %s1104_s2 = inlined_call_operand.vmem [shape: f32[2,8], index: 2, kind: input, shape index: {}]   ;;  %s1105_s3 = inlined_call_operand.vmem [shape: bf16[32,128], index: 3, kind: input, shape index: {}]   ;;  %s1106_s4 = inlined_call_operand.vmem [shape: bf16[64,128], index: 4, kind: input, shape index: {}]   ;;  %s1107_s5 = inlined_call_operand.hbm [shape: bf16[8,128], index: 5, kind: input, shape index: {}]   ;;  %s1108_s6 = inlined_call_operand.hbm [shape: f32[1,128], index: 6, kind: input, shape index: {}]   ;;  %s1109_s7 = inlined_call_operand.hbm [shape: f32[1,128], index: 7, kind: input, shape index: {}]   ;;  %s1110_s8 = inlined_call_operand.vmem [shape: bf16[128,128], index: 8, kind: input, shape index: {}]   ;;  %s1111_s9 = inlined_call_operand.hbm [shape: f32[1,128], index: 9, kind: input, shape index: {}]   ;;  %s1112_s10 = inlined_call_operand.vmem [shape: bf16[128,128], index: 10, kind: input, shape index: {}]   ;;  %s1113_s11 = inlined_call_operand.hbm [shape: f32[1,128], index: 11, kind: input, shape index: {}]   ;;  %s1114_s12 = inlined_call_operand.hbm [shape: f32[2,128], index: 12, kind: output, shape index: {}]  }
   0x1   :  { %18 = vsyncpa [#allocation6], 0 }
   0x2   :  { %19 = vsyncpa [#allocation9], 0 }
   0x3   :  { %20 = vsyncpa [#allocation4], 0  ;;  %s847_s21 = smov [#allocation5]   ;;  %s848_s23 = smov [#allocation8]  }
   0x4   :  { %s47_s22 = sshll.u32 %s847_s21, 4  ;;  %s69_s24 = sshll.u32 %s848_s23, 4  ;;  %s48_s22 = int_to_ptr.vmem [resolvable:$true] %s47_s22  ;;  %s70_s24 = int_to_ptr.vmem [resolvable:$true] %s69_s24 }
   0x5   :  { %s707_s27 = scalar_lea.hbm %s1108_s6, 16 }
   0x6   :  { %p708_p0 = scmp.ne.s32.totalorder %s1108_s6, %s707_s27  ;;  %p711_p1 = scmp.lt.u32.totalorder %s707_s27, %s1108_s6 }
   0x8   :  { %p713_p2 = pnand %p711_p1, %p708_p0 }
   0xa   :  { %716 = shalt.err (!%p713_p2)
}
   0xb   :  { %s717_s14 = scalar_lea.vmem %s48_s22, 16  ;;  %s721_s15 = scalar_lea.vmem %s48_s22, 32 }
   0xc   :  { %p718_p3 = scmp.ne.s32.totalorder %s48_s22, %s717_s14  ;;  %p722_p4 = scmp.lt.s32.totalorder %s48_s22, %s48_s22 }
   0xd   :  { %p723_p5 = scmp.lt.s32.totalorder %s721_s15, %s717_s14 }
   0xf   :  { %p724_p6 = por %p723_p5, %p722_p4 }
  0x11   :  { %p725_p7 = pnand %p724_p6, %p718_p3 }
  0x13   :  { %728 = shalt.err (!%p725_p7)
}
  0x14   :  { %50 = dma.hbm_to_vmem [thread:$0]  %s1108_s6, 16, %s48_s22, [#allocation6]  }
  0x15   :  { %s729_s20 = scalar_lea.hbm %s1111_s9, 16 }
  0x16   :  { %p730_p8 = scmp.ne.s32.totalorder %s1111_s9, %s729_s20  ;;  %p733_p9 = scmp.lt.u32.totalorder %s729_s20, %s1111_s9 }
  0x18   :  { %p735_p10 = pnand %p733_p9, %p730_p8 }
  0x1a   :  { %738 = shalt.err (!%p735_p10)
}
  0x1b   :  { %s739_s27 = scalar_lea.vmem %s70_s24, 16  ;;  %s743_s28 = scalar_lea.vmem %s70_s24, 32 }
  0x1c   :  { %p740_p11 = scmp.ne.s32.totalorder %s70_s24, %s739_s27  ;;  %p744_p12 = scmp.lt.s32.totalorder %s70_s24, %s70_s24 }
  0x1d   :  { %p745_p13 = scmp.lt.s32.totalorder %s743_s28, %s739_s27 }
  0x1f   :  { %p746_p0 = por %p745_p13, %p744_p12 }
  0x21   :  { %p747_p1 = pnand %p746_p0, %p740_p11 }
  0x23   :  { %750 = shalt.err (!%p747_p1)
}
  0x24   :  { %72 = dma.hbm_to_vmem [thread:$0]  %s1111_s9, 16, %s70_s24, [#allocation9]  }
  0x25   :  { %s849_s29 = smov [#allocation2]   ;;  %s850_s13 = smov [#allocation7]  }
  0x26   :  { %s37_s30 = sshll.u32 %s849_s29, 4  ;;  %s57_s14 = sshll.u32 %s850_s13, 4  ;;  %s38_s30 = int_to_ptr.vmem [resolvable:$true] %s37_s30  ;;  %s58_s14 = int_to_ptr.vmem [resolvable:$true] %s57_s14 }
  0x27   :  { %s751_s17 = scalar_lea.hbm %s1107_s5, 64 }
  0x28   :  { %p752_p2 = scmp.ne.s32.totalorder %s1107_s5, %s751_s17  ;;  %p755_p3 = scmp.lt.u32.totalorder %s751_s17, %s1107_s5 }
  0x2a   :  { %p757_p4 = pnand %p755_p3, %p752_p2 }
  0x2c   :  { %760 = shalt.err (!%p757_p4)
}
  0x2d   :  { %s761_s9 = scalar_lea.vmem %s38_s30, 64  ;;  %p766_p6 = scmp.lt.s32.totalorder %s38_s30, %s38_s30 }
  0x2e   :  { %p762_p5 = scmp.ne.s32.totalorder %s38_s30, %s761_s9  ;;  %p767_p7 = scmp.lt.s32.totalorder %s761_s9, %s761_s9 }
  0x30   :  { %p768_p8 = por %p767_p7, %p766_p6 }
  0x32   :  { %p769_p9 = pnand %p768_p8, %p762_p5 }
  0x34   :  { %772 = shalt.err (!%p769_p9)
}
  0x35   :  { %40 = dma.hbm_to_vmem [thread:$0]  %s1107_s5, 64, %s38_s30, [#allocation3]  }
  0x36   :  { %s773_s27 = scalar_lea.hbm %s1109_s7, 16 }
  0x37   :  { %p774_p10 = scmp.ne.s32.totalorder %s1109_s7, %s773_s27  ;;  %p777_p11 = scmp.lt.u32.totalorder %s773_s27, %s1109_s7 }
  0x39   :  { %p779_p12 = pnand %p777_p11, %p774_p10 }
  0x3b   :  { %782 = shalt.err (!%p779_p12)
}
  0x3c   :  { %s783_s13 = scalar_lea.vmem %s58_s14, 16  ;;  %s787_s15 = scalar_lea.vmem %s58_s14, 32 }
  0x3d   :  { %p784_p13 = scmp.ne.s32.totalorder %s58_s14, %s783_s13  ;;  %p788_p0 = scmp.lt.s32.totalorder %s58_s14, %s58_s14 }
  0x3e   :  { %p789_p1 = scmp.lt.s32.totalorder %s787_s15, %s783_s13 }
  0x40   :  { %p790_p2 = por %p789_p1, %p788_p0 }
  0x42   :  { %p791_p3 = pnand %p790_p2, %p784_p13 }
  0x44   :  { %794 = shalt.err (!%p791_p3)
}
  0x45   :  { %60 = dma.hbm_to_vmem [thread:$0]  %s1109_s7, 16, %s58_s14, [#allocation6]  }
  0x46   :  { %s851_s16 = smov [#allocation10]   ;;  %s795_s20 = scalar_lea.hbm %s1113_s11, 16 }
  0x47   :  { %s81_s17 = sshll.u32 %s851_s16, 4  ;;  %p796_p4 = scmp.ne.s32.totalorder %s1113_s11, %s795_s20  ;;  %s82_s17 = int_to_ptr.vmem [resolvable:$true] %s81_s17 }
  0x48   :  { %p799_p5 = scmp.lt.u32.totalorder %s795_s20, %s1113_s11 }
  0x4a   :  { %p801_p6 = pnand %p799_p5, %p796_p4 }
  0x4c   :  { %804 = shalt.err (!%p801_p6)
}
  0x4d   :  { %s805_s25 = scalar_lea.vmem %s82_s17, 16  ;;  %s809_s7 = scalar_lea.vmem %s82_s17, 32 }
  0x4e   :  { %p806_p7 = scmp.ne.s32.totalorder %s82_s17, %s805_s25  ;;  %p810_p8 = scmp.lt.s32.totalorder %s82_s17, %s82_s17 }
  0x4f   :  { %p811_p9 = scmp.lt.s32.totalorder %s809_s7, %s805_s25 }
  0x51   :  { %p812_p10 = por %p811_p9, %p810_p8 }
  0x53   :  { %p813_p11 = pnand %p812_p10, %p806_p7 }
  0x55   :  { %816 = shalt.err (!%p813_p11)
}
  0x56   :  { %84 = dma.hbm_to_vmem [thread:$0]  %s1113_s11, 16, %s82_s17, [#allocation9]  }
  0x57   :  { %839 = dma.done.wait [#allocation3], 64  }
  0x58   :  { %840 = vsyncadd [#allocation3], 4294967232 }
  0x59   :  { %841 = dma.done.wait [#allocation6], 32  }
  0x5a   :  { %842 = vsyncadd [#allocation6], 4294967264 }
  0x5b   :  { %843 = dma.done.wait [#allocation9], 32  }
  0x5c   :  { %844 = vsyncadd [#allocation9], 4294967264  ;;  %v852_v0 = vmov 0.0   ;;  %vm853_vm0 = vmmov 0   ;;  %v683_v1 = vld [vmem:[%s1106_s4] sm:$0xff]   ;;  %v684_v2 = vld [vmem:[%s1106_s4 + $0x8] sm:$0xff]  }
  0x5d   :  { %609 = vmatprep.subr.bf16.mxu0 %v852_v0  ;;  %621 = vmatprep.subr.bf16.mxu1 %v852_v0  ;;  %v685_v3 = vld [vmem:[%s1105_s3] sm:$0xff]   ;;  %v687_v4 = vld [vmem:[%s1105_s3 + $0x8] sm:$0xff]   ;;  %v686_v5 = vld [vmem:[%s1106_s4 + $0x10] sm:$0xff]   ;;  %vm263_vm1 = vcmask 1043456   ;;  %vm199_vm2 = vcmask 261120   ;;  %vm143_vm3 = vcmask 523264  }
  0x5e   :  { %625 = vmatprep.mubr.msk.bf16.mxu1 %vm853_vm0, %v852_v0  ;;  %617 = vmatprep.mubr.msk.bf16.mxu0 %vm853_vm0, %v852_v0  ;;  %v101_v6 = vld [vmem:[%s1102_s0] sm:$0x3]  ;;  %vm259_vm4 = vcmask 64512   ;;  %v688_v10 = vld [vmem:[%s1106_s4 + $0x18] sm:$0xff]   ;;  %v690_v16 = vld [vmem:[%s1110_s8 + $0x8] sm:$0xff]   ;;  %s854_s4 = smov [#allocation11]  }
  0x5f   :  { %610 = vmatpush3.bf16.msra.mxu0 %v683_v1  ;;  %622 = vmatpush3.bf16.msra.mxu1 %v685_v3  ;;  %v251_v7 = vld [vmem:[#allocation2] sm:$0xf]  ;;  %v102_v8 = vpack.c.bf16 %v101_v6, %v101_v6  ;;  %v691_v17 = vld [vmem:[%s1110_s8 + $0x10] sm:$0xff]   ;;  %v692_v18 = vld [vmem:[%s1110_s8 + $0x18] sm:$0xff]   ;;  %s541_s24 = sshll.u32 %s854_s4, 4  ;;  %s542_s24 = int_to_ptr.vmem [resolvable:$true] %s541_s24 }
  0x60   :  { %611 = vmatprep.subr.bf16.mxu0 %v852_v0  ;;  %623 = vmatprep.subr.bf16.mxu1 %v852_v0  ;;  %v103_v9 = vld [vmem:[%s1103_s1] sm:$0x3]  ;;  %v265_v11 = vsel %vm263_vm1, %v251_v7, 0  ;;  %v694_v20 = vld [vmem:[%s1110_s8 + $0x28] sm:$0xff]   ;;  %v695_v21 = vld [vmem:[%s1110_s8 + $0x30] sm:$0xff]   ;;  %p822_p13 = scmp.lt.s32.totalorder %s542_s24, %s542_s24 }
  0x61   :  { %v105_v12 = vld [vmem:[%s1104_s2] sm:$0x3]  ;;  %v104_v14 = vpack.c.bf16 %v103_v9, %v103_v9  ;;  %v696_v22 = vld [vmem:[%s1110_s8 + $0x38] sm:$0xff]   ;;  %v698_v24 = vld [vmem:[%s1112_s10 + $0x8] sm:$0xff]  }
  0x62   :  { %v689_v13 = vld [vmem:[%s1110_s8] sm:$0xff]   ;;  %v106_v15 = vpack.c.bf16 %v105_v12, %v105_v12  ;;  %v699_v25 = vld [vmem:[%s1112_s10 + $0x10] sm:$0xff]   ;;  %v700_v26 = vld [vmem:[%s1112_s10 + $0x18] sm:$0xff]  }
  0x63   :  { %612 = vmatpush3.bf16.msra.mxu0 %v684_v2  ;;  %624 = vmatpush3.bf16.msra.mxu1 %v687_v4  ;;  %v693_v19 = vld [vmem:[%s1110_s8 + $0x20] sm:$0xff]   ;;  %v702_v28 = vld [vmem:[%s1112_s10 + $0x28] sm:$0xff]   ;;  %v703_v49 = vld [vmem:[%s1112_s10 + $0x30] sm:$0xff]  }
  0x64   :  { %613 = vmatprep.subr.bf16.mxu0 %v852_v0  ;;  %629 = vmatprep.subr.bf16.mxu1 %v852_v0  ;;  %v697_v23 = vld [vmem:[%s1112_s10] sm:$0xff]   ;;  %v704_v50 = vld [vmem:[%s1112_s10 + $0x38] sm:$0xff]   ;;  %v563_v51 = vld [vmem:[#allocation8] ss:$0 sm:$0xff] }
  0x65   :  { %v701_v27 = vld [vmem:[%s1112_s10 + $0x20] sm:$0xff]   ;;  %v572_v59 = vld [vmem:[#allocation10] ss:$0 sm:$0xff]  ;;  %s817_s10 = scalar_lea.vmem %s542_s24, 32 }
  0x66   :  { %626 = vmatmul.mubr.msk.bf16.vlgmr.msra.gmra.mrb[0].mxu1 %vm199_vm2, %v102_v8  ;;  %v560_v34 = vld [vmem:[#allocation5] ss:$0 sm:$0xff]  ;;  %v561_v44 = vld [vmem:[#allocation7] ss:$0 sm:$0xff]  ;;  %p818_p12 = scmp.ne.s32.totalorder %s542_s24, %s817_s10  ;;  %p823_p0 = scmp.lt.s32.totalorder %s817_s10, %s817_s10 }
  0x67   :  { %614 = vmatpush3.bf16.msra.mxu0 %v686_v5  ;;  %630 = vmatpush3.bf16.msra.mxu1 %v265_v11 }
  0x68   :  { %615 = vmatprep.subr.bf16.mxu0 %v852_v0  ;;  %631 = vmatprep.mubr.msk.bf16.mxu1 %vm853_vm0, %v852_v0  ;;  %p824_p1 = por %p823_p0, %p822_p13 }
  0x69   :  { %655 = vmatprep.subr.bf16.mxu1 %v852_v0 }
  0x6a   :  { %p825_p2 = pnand %p824_p1, %p818_p12 }
  0x6b   :  { %616 = vmatpush3.bf16.msra.mxu0 %v688_v10 }
  0x6c   :  { %635 = vmatprep.subr.bf16.mxu0 %v852_v0 }
  0x6e   :  { %618 = vmatmul.mubr.msk.bf16.vlgmr.msra.gmra.mrb[0].mxu0 %vm143_vm3, %v104_v14  ;;  %632 = vmatmul.mubr.msk.bf16.vlgmr.msra.gmra.mrb[4].mxu1 %vm259_vm4, %v106_v15 }
  0x6f   :  { %636 = vmatpush3.bf16.msra.mxu0 %v689_v13  ;;  %651 = vmatprep.mubr.msk.bf16.mxu0 %vm853_vm0, %v852_v0 }
  0x70   :  { %637 = vmatprep.subr.bf16.mxu0 %v852_v0  ;;  %671 = vmatprep.mubr.msk.bf16.mxu1 %vm853_vm0, %v852_v0 }
  0x71   :  { %656 = vmatpush3.bf16.msra.mxu1 %v697_v23 }
  0x72   :  { %657 = vmatprep.subr.bf16.mxu1 %v852_v0 }
  0x73   :  { %638 = vmatpush3.bf16.msra.mxu0 %v690_v16 }
  0x74   :  { %639 = vmatprep.subr.bf16.mxu0 %v852_v0 }
  0x75   :  { %658 = vmatpush3.bf16.msra.mxu1 %v698_v24 }
  0x76   :  { %659 = vmatprep.subr.bf16.mxu1 %v852_v0 }
  0x77   :  { %640 = vmatpush3.bf16.msra.mxu0 %v691_v17 }
  0x78   :  { %641 = vmatprep.subr.bf16.mxu0 %v852_v0 }
  0x79   :  { %660 = vmatpush3.bf16.msra.mxu1 %v699_v25 }
  0x7a   :  { %661 = vmatprep.subr.bf16.mxu1 %v852_v0 }
  0x7b   :  { %642 = vmatpush3.bf16.msra.mxu0 %v692_v18 }
  0x7c   :  { %643 = vmatprep.subr.bf16.mxu0 %v852_v0 }
  0x7d   :  { %662 = vmatpush3.bf16.msra.mxu1 %v700_v26 }
  0x7e   :  { %663 = vmatprep.subr.bf16.mxu1 %v852_v0 }
  0x7f   :  { %644 = vmatpush3.bf16.msra.mxu0 %v693_v19 }
  0x80   :  { %645 = vmatprep.subr.bf16.mxu0 %v852_v0 }
  0x81   :  { %664 = vmatpush3.bf16.msra.mxu1 %v701_v27 }
  0x82   :  { %665 = vmatprep.subr.bf16.mxu1 %v852_v0 }
  0x83   :  { %646 = vmatpush3.bf16.msra.mxu0 %v694_v20 }
  0x84   :  { %647 = vmatprep.subr.bf16.mxu0 %v852_v0 }
  0x85   :  { %666 = vmatpush3.bf16.msra.mxu1 %v702_v28 }
  0x86   :  { %667 = vmatprep.subr.bf16.mxu1 %v852_v0 }
  0x87   :  { %648 = vmatpush3.bf16.msra.mxu0 %v695_v21 }
  0x88   :  { %649 = vmatprep.subr.bf16.mxu0 %v852_v0 }
  0x89   :  { %668 = vmatpush3.bf16.msra.mxu1 %v703_v49 }
  0x8a   :  { %669 = vmatprep.subr.bf16.mxu1 %v852_v0 }
  0x8b   :  { %650 = vmatpush3.bf16.msra.mxu0 %v696_v22 }
  0x8d   :  { %670 = vmatpush3.bf16.msra.mxu1 %v704_v50 }
 0x139   :  { %v237_v29 = vpop.f32.mrb[0].mxu1 }
 0x13a   :  { %v627_v30 = vpop.f32.mrb[1].mxu1 }
 0x13b   :  { %v240_v31 = vpop.f32.mrb[2].mxu1 }
 0x13c   :  { %v628_v32 = vpop.f32.mrb[3].mxu1 }
 0x141   :  { %v181_v33 = vpop.f32.mrb[0].mxu0  ;;  %v301_v38 = vpop.f32.mrb[4].mxu1 }
 0x142   :  { %v238_v35 = vadd.f32 %v237_v29, %v181_v33  ;;  %v619_v36 = vpop.f32.mrb[1].mxu0  ;;  %v633_v41 = vpop.f32.mrb[5].mxu1  ;;  %v302_v45 = vadd.f32 %v561_v44, %v301_v38 }
 0x143   :  { %v184_v37 = vpop.f32.mrb[2].mxu0  ;;  %v304_v42 = vpop.f32.mrb[6].mxu1 }
 0x144   :  { %v250_v39 = vadd.f32 %v560_v34, %v238_v35  ;;  %v620_v40 = vpop.f32.mrb[3].mxu0  ;;  %v634_v43 = vpop.f32.mrb[7].mxu1 }
 0x146   :  { %705 = vtanh.f32 %v250_v39 }
 0x150   :  { %v706_v46 = vpop.eup %705 }
 0x151   :  { %v308_v47 = vadd.f32 %v706_v46, %v302_v45 }
 0x153   :  { %v309_v48 = vpack.c.bf16 %v308_v47, %v308_v47 }
 0x155   :  { %652 = vmatmul.mubr.bf16.vlgmr.msra.gmra.mrb[4].mxu0 %v309_v48 }
 0x228   :  { %v415_v52 = vpop.f32.mrb[4].mxu0 }
 0x229   :  { %v416_v53 = vadd.f32 %v563_v51, %v415_v52  ;;  %v653_v54 = vpop.f32.mrb[5].mxu0 }
 0x22a   :  { %v418_v55 = vpop.f32.mrb[6].mxu0 }
 0x22b   :  { %v421_v56 = vmax.f32 %v416_v53, 0.0  ;;  %v654_v57 = vpop.f32.mrb[7].mxu0 }
 0x22d   :  { %v422_v58 = vpack.c.bf16 %v421_v56, %v421_v56 }
 0x22f   :  { %672 = vmatmul.mubr.bf16.vlgmr.msra.gmra.mrb[8].mxu1 %v422_v58 }
 0x302   :  { %v528_v60 = vpop.f32.mrb[8].mxu1 }
 0x303   :  { %v529_v61 = vadd.f32 %v572_v59, %v528_v60  ;;  %v673_v62 = vpop.f32.mrb[9].mxu1 }
 0x304   :  { %v531_v63 = vpop.f32.mrb[10].mxu1 }
 0x305   :  { %534 = vst [vmem:[#allocation11] sm:$0x3] %v529_v61  ;;  %v674_v0 = vpop.f32.mrb[11].mxu1 }
 0x306   :  { %828 = shalt.err (!%p825_p2)
}
 0x307   :  { %s829_s7 = scalar_lea.hbm %s1114_s12, 32 }
 0x308   :  { %p830_p3 = scmp.ne.s32.totalorder %s1114_s12, %s829_s7  ;;  %p833_p4 = scmp.lt.u32.totalorder %s829_s7, %s1114_s12 }
 0x30a   :  { %p835_p5 = pnand %p833_p4, %p830_p3 }
 0x30c   :  { %838 = shalt.err (!%p835_p5)
}
 0x30d   :  { %544 = dma.vmem_to_hbm [thread:$0]  %s542_s24, 32, %s1114_s12, [#allocation4]  }
 0x30e   :  { %845 = dma.done.wait [#allocation4], 32  }
 0x30f   :  { %846 = vsyncadd [#allocation4], 4294967264 }
 0x310   :  { %548 = vsyncpa [#allocation3], 1 }
 0x311   :  { %549 = vsyncpa [#allocation6], 1 }
 0x312   :  { %550 = vsyncpa [#allocation9], 1 }
 0x313   :  { %551 = vsyncpa [#allocation4], 1 }

</bundles_post_ra>
